<compile_context>
chip_gen: v5e
topology: v5e:2x2
jax: 0.10.0
libtpu: 0.0.40
codegen_flags: <defaults>
</compile_context>

<pallas_src>
import functools

import jax
import jax.numpy as jnp
from jax.experimental import pallas as pl
from jax.experimental.pallas import tpu as pltpu


# ----------------------------------------------------------------------------
# Kernel
# ----------------------------------------------------------------------------
def _mlp_kernel(x_ref, w1_ref, b1_ref, w2_ref, b2_ref, w3_ref, b3_ref, o_ref):
    # x arrives f32 at its logical (16-granule) feature width; cast to bf16
    # in-kernel (VPU) so the wrapper never materializes a padded bf16 copy.
    x = x_ref[...].astype(jnp.bfloat16)                              # (tb, d_in_p)
    # fc1 (bf16 MXU, f32 accumulate) + bias + ReLU in f32
    h1 = jnp.dot(x, w1_ref[...], preferred_element_type=jnp.float32)
    h1 = jnp.maximum(h1 + b1_ref[...], 0.0).astype(jnp.bfloat16)
    # dropout (identity in eval mode)
    # fc2 + bias + ReLU
    h2 = jnp.dot(h1, w2_ref[...], preferred_element_type=jnp.float32)
    h2 = jnp.maximum(h2 + b2_ref[...], 0.0).astype(jnp.bfloat16)
    # dropout (identity in eval mode)
    # fc3 (logits, no activation) -- lane-dense padded output
    out = jnp.dot(h2, w3_ref[...], preferred_element_type=jnp.float32)
    o_ref[...] = (out + b3_ref[...]).astype(o_ref.dtype)


# ----------------------------------------------------------------------------
# Padding / budget helpers
# ----------------------------------------------------------------------------
def _round_up(n, m):
    return ((n + m - 1) // m) * m


def _pad2(a, rows, cols):
    if a.shape == (rows, cols):
        return a
    return jnp.pad(a, ((0, rows - a.shape[0]), (0, cols - a.shape[1])))


@functools.lru_cache(maxsize=None)
def _vmem_budget():
    """(working-set budget, vmem_limit_bytes) sized from this chip's VMEM."""
    phys = 64 * 1024 * 1024          # v7x per-TC physical = minimum across gens
    try:
        cap = getattr(pltpu.get_tpu_info(), "vmem_capacity_bytes", None)
        if cap:
            phys = int(cap)
    except Exception:
        pass                          # robustness guard only; keep conservative default
    budget = phys // 2                # resident weights + pipelined I/O working set
    vmem_limit = (phys * 3) // 4      # headroom for compiler scratch
    return budget, vmem_limit


def _probe_kernel(x_ref, o_ref):
    o_ref[...] = x_ref[...]


@functools.lru_cache(maxsize=None)
def _single_buffered_weights_supported():
    """One-time feature probe: does this JAX accept pipeline_mode=pl.Buffered(1)?"""
    try:
        spec = pl.BlockSpec((8, 128), lambda i: (0, 0), pipeline_mode=pl.Buffered(1))
        fn = pl.pallas_call(
            _probe_kernel,
            out_shape=jax.ShapeDtypeStruct((8, 128), jnp.float32),
            grid=(1,),
            in_specs=[spec],
            out_specs=pl.BlockSpec((8, 128), lambda i: (0, 0)),
        )
        jax.block_until_ready(fn(jnp.zeros((8, 128), jnp.float32)))
        return True
    except Exception:
        return False


_TB_CAP = 512   # measured: 512-row tiles ~85% of HBM roofline; bigger buys little


def _choose_batch_tile(B, d_in_p, h_p, c_p, *, single_buffered, out_itemsize, budget):
    """Largest 16-row-aligned batch tile whose working set fits the VMEM budget.

    Single-TC chips (v5e/v6e) just want the biggest tile; no forced multi-step
    split.  Weight bytes are doubled if the Buffered(1) probe failed (default
    double-buffering of the grid-invariant blocks).
    """
    wbuf = 1 if single_buffered else 2
    fixed = wbuf * ((d_in_p * h_p + h_p * h_p + h_p * c_p) * 2      # bf16 weights
                    + (2 * h_p + c_p) * 4)                          # f32 biases
    if fixed > budget:
        # TODO(synk): K-tiled fallback (grid axis over h_p with f32 VMEM
        # accumulator + pl.when init/finalize) for hidden sizes whose resident
        # weights exceed VMEM (relevant on v7x's 64 MiB).
        raise ValueError(
            f"resident weights ({fixed} B) exceed VMEM budget ({budget} B); "
            "K-tiled fallback not implemented")
    per_row = (2 * d_in_p * 4            # x tile (f32, double-buffered)
               + 2 * c_p * out_itemsize  # out tile (double-buffered)
               + 2 * h_p * 4             # h1/h2 f32 epilogue temporaries
               + 2 * h_p * 2             # h1/h2 bf16 MXU operands
               + c_p * 4)                # f32 logits before downcast
    tb_max = max(16, (budget - fixed) // per_row)
    tb = min(_TB_CAP, (tb_max // 16) * 16, _round_up(B, 16))
    return max(tb, 16)


# ----------------------------------------------------------------------------
# pallas_call builder + wrapper
# ----------------------------------------------------------------------------
def _wspec(shape, single_buffer):
    # Grid-invariant weight/bias block: constant index_map; single-buffered if supported.
    if single_buffer:
        return pl.BlockSpec(shape, lambda i: (0,) * len(shape),
                            pipeline_mode=pl.Buffered(1))
    return pl.BlockSpec(shape, lambda i: (0,) * len(shape))


def _build_forward(tb, Bp, d_in_p, h_p, c_p, single_buffer_weights, out_dtype, vmem_limit):
    out_itemsize = jnp.dtype(out_dtype).itemsize
    flops = 2 * Bp * (d_in_p * h_p + h_p * h_p + h_p * c_p)
    bytes_accessed = (
        Bp * d_in_p * 4                                             # x (f32, unpadded lanes)
        + (d_in_p * h_p + h_p * h_p + h_p * c_p) * 2                # weights (bf16)
        + (2 * h_p + c_p) * 4                                       # biases (f32)
        + Bp * c_p * out_itemsize                                   # logits
    )
    cost = pl.CostEstimate(flops=flops, transcendentals=0, bytes_accessed=bytes_accessed)

    return pl.pallas_call(
        _mlp_kernel,
        out_shape=jax.ShapeDtypeStruct((Bp, c_p), out_dtype),
        grid_spec=pltpu.PrefetchScalarGridSpec(
            num_scalar_prefetch=0,
            grid=(Bp // tb,),
            in_specs=[
                pl.BlockSpec((tb, d_in_p), lambda i: (i, 0)),        # x (batch-tiled, f32)
                _wspec((d_in_p, h_p), single_buffer_weights),        # w1 (in, out)
                _wspec((1, h_p), single_buffer_weights),             # b1
                _wspec((h_p, h_p), single_buffer_weights),           # w2
                _wspec((1, h_p), single_buffer_weights),             # b2
                _wspec((h_p, c_p), single_buffer_weights),           # w3
                _wspec((1, c_p), single_buffer_weights),             # b3
            ],
            out_specs=pl.BlockSpec((tb, c_p), lambda i: (i, 0)),
        ),
        compiler_params=pltpu.CompilerParams(
            # TODO(synk): on v7x (2 TensorCores) switch to pltpu.CORE_PARALLEL once
            # generation detection is plumbed; "parallel" is safe on single-TC chips.
            dimension_semantics=("parallel",),
            vmem_limit_bytes=vmem_limit,
        ),
        cost_estimate=cost,
    )


def prepare_params(params):
    """One-time prep: lane-dense pad H/C, 16-granule pad d_in, bf16-cast weights.

    Weights are stored pre-transposed as (in_features, out_features), so the
    kernel computes y = x @ W + b (== PyTorch x @ W.T + b).  Zero padding keeps
    padded rows/cols at exactly 0 through bias+ReLU.
    """
    w1, b1, w2, b2, w3, b3 = (params[k] for k in ("w1", "b1", "w2", "b2", "w3", "b3"))
    d_in, h = w1.shape
    c = w3.shape[1]
    d_in_p = _round_up(d_in, 16)        # row granule only; MXU tolerates K < 128
    h_p = _round_up(h, 128)             # lane-dense (128-mult; 256-rounding adds bytes only)
    c_p = _round_up(c, 128)
    return {
        "w1": _pad2(w1, d_in_p, h_p).astype(jnp.bfloat16),
        "b1": _pad2(b1, 1, h_p),                      # biases stay f32 (f32 epilogue)
        "w2": _pad2(w2, h_p, h_p).astype(jnp.bfloat16),
        "b2": _pad2(b2, 1, h_p),
        "w3": _pad2(w3, h_p, c_p).astype(jnp.bfloat16),
        "b3": _pad2(b3, 1, c_p),
        "logical_dims": (d_in, h, c),
        "padded_dims": (d_in_p, h_p, c_p),
    }


def simple_thinking_net_forward(x, prepared, *, batch_tile=None, out_dtype=jnp.float32):
    """Fused MLP forward. x: (B, D_in) float32. prepared: output of prepare_params."""
    d_in, _, c = prepared["logical_dims"]
    d_in_p, h_p, c_p = prepared["padded_dims"]
    B, D = x.shape
    assert D == d_in, "input feature dim mismatch"

    single = _single_buffered_weights_supported()
    budget, vmem_limit = _vmem_budget()
    out_itemsize = jnp.dtype(out_dtype).itemsize

    if batch_tile is not None:
        tb = batch_tile
        assert tb % 16 == 0, "batch_tile must be a multiple of 16 (bf16 sublane packing)"
    else:
        tb = _choose_batch_tile(B, d_in_p, h_p, c_p, single_buffered=single,
                                out_itemsize=out_itemsize, budget=budget)

    Bp = _round_up(max(B, tb), tb)       # pad batch to a tile multiple (sliced below)

    xp = x.astype(jnp.float32)           # stays f32; bf16 cast happens in-kernel
    if (Bp, d_in_p) != (B, d_in):
        xp = jnp.pad(xp, ((0, Bp - B), (0, d_in_p - d_in)))

    out_p = _build_forward(tb, Bp, d_in_p, h_p, c_p, single, out_dtype, vmem_limit)(
        xp, prepared["w1"], prepared["b1"], prepared["w2"], prepared["b2"],
        prepared["w3"], prepared["b3"])

    return out_p[:B, :c]                 # slice padded rows/lanes back to logical shape


# ----------------------------------------------------------------------------
# Init + references
# ----------------------------------------------------------------------------
def init_params(key, input_size, hidden_size, num_classes):
    """Deterministic synthetic init (weights stored as (in, out) = PyTorch W.T)."""
    ks = jax.random.split(key, 6)

    def lin(kw, kb, fan_in, fan_out):
        bound = 1.0 / jnp.sqrt(fan_in)
        w = jax.random.uniform(kw, (fan_in, fan_out), jnp.float32, -bound, bound)
        b = jax.random.uniform(kb, (1, fan_out), jnp.float32, -bound, bound)
        return w, b

    w1, b1 = lin(ks[0], ks[1], input_size, hidden_size)
    w2, b2 = lin(ks[2], ks[3], hidden_size, hidden_size)
    w3, b3 = lin(ks[4], ks[5], hidden_size, num_classes)
    return {"w1": w1, "b1": b1, "w2": w2, "b2": b2, "w3": w3, "b3": b3}


def _reference_forward_f32(x, p):
    h1 = jnp.maximum(x @ p["w1"] + p["b1"], 0.0)
    h2 = jnp.maximum(h1 @ p["w2"] + p["b2"], 0.0)
    return h2 @ p["w3"] + p["b3"]


def _reference_forward_bf16(x, p):
    """Mirrors the kernel's precision path: bf16 operands, f32 accumulation/epilogue."""
    bf = jnp.bfloat16
    h1 = jnp.dot(x.astype(bf), p["w1"].astype(bf), preferred_element_type=jnp.float32)
    h1 = jnp.maximum(h1 + p["b1"], 0.0).astype(bf)
    h2 = jnp.dot(h1, p["w2"].astype(bf), preferred_element_type=jnp.float32)
    h2 = jnp.maximum(h2 + p["b2"], 0.0).astype(bf)
    out = jnp.dot(h2, p["w3"].astype(bf), preferred_element_type=jnp.float32)
    return out + p["b3"]


# ----------------------------------------------------------------------------
# Demo / self-check
# ----------------------------------------------------------------------------
if __name__ == "__main__":
    key = jax.random.PRNGKey(0)
    kx, kp = jax.random.split(key)

    batch, input_size, hidden_size, num_classes = 8, 16, 32, 4
    x = jax.random.normal(kx, (batch, input_size), jnp.float32)
    params = init_params(kp, input_size, hidden_size, num_classes)
    prepared = prepare_params(params)          # pad lane-dense H/C + bf16 cast, once

    out = simple_thinking_net_forward(x, prepared)
    out = jax.block_until_ready(out)
    assert out.shape == (batch, num_classes)

    ref_bf16 = _reference_forward_bf16(x, params).astype(jnp.float32)
    ref_f32 = _reference_forward_f32(x, params)
    assert jnp.allclose(out, ref_bf16, atol=2e-3, rtol=2e-3), "mismatch vs bf16-path reference"
    assert jnp.allclose(out, ref_f32, atol=5e-2, rtol=5e-2), "mismatch vs f32 reference"

    print("KERNEL_OK")
</pallas_src>

<mosaic_0001>
module attributes {stable_mosaic.version = 11 : i64} {
  func.func @_probe_kernel(%arg0: i32, %arg1: memref<8x128xf32, #tpu.memory_space<vmem>>, %arg2: memref<8x128xf32, #tpu.memory_space<vmem>>) attributes {dimension_semantics = [#tpu.dimension_semantics<arbitrary>], iteration_bounds = array<i64: 1>, scalar_prefetch = 0 : i64, scratch_operands = 0 : i64, tpu.core_type = #tpu.core_type<tc>, window_params = [{pipeline_mode = #tpu.pipeline_mode<synchronous>, transform_indices = @transform_0, window_bounds = array<i64: 8, 128>}, {pipeline_mode = #tpu.pipeline_mode<synchronous>, transform_indices = @transform_1, window_bounds = array<i64: 8, 128>}]} {
    %c0 = arith.constant 0 : index
    %c0_0 = arith.constant 0 : index
    %0 = vector.load %arg1[%c0, %c0_0] : memref<8x128xf32, #tpu.memory_space<vmem>>, vector<8x128xf32>
    %c0_1 = arith.constant 0 : index
    %c0_2 = arith.constant 0 : index
    %1 = vector.load %arg2[%c0_1, %c0_2] : memref<8x128xf32, #tpu.memory_space<vmem>>, vector<8x128xf32>
    tpu.vector_store %arg2[%c0_1, %c0_2], %0 {strides = array<i32>} : memref<8x128xf32, #tpu.memory_space<vmem>>, vector<8x128xf32>,
    return
  }
  func.func @transform_0(%arg0: i32) -> (i32, i32) {
    %c0_i32 = arith.constant 0 : i32
    %c0_i32_0 = arith.constant 0 : i32
    %c0_i32_1 = arith.constant 0 : i32
    return %c0_i32, %c0_i32_0 : i32, i32
  }
  func.func @transform_1(%arg0: i32) -> (i32, i32) {
    %c0_i32 = arith.constant 0 : i32
    %c0_i32_0 = arith.constant 0 : i32
    %c0_i32_1 = arith.constant 0 : i32
    return %c0_i32, %c0_i32_0 : i32, i32
  }
}

module attributes {stable_mosaic.version = 11 : i64} {
  func.func @_mlp_kernel(%arg0: i32, %arg1: memref<16x16xf32, #tpu.memory_space<vmem>>, %arg2: memref<16x128xbf16, #tpu.memory_space<vmem>>, %arg3: memref<1x128xf32, #tpu.memory_space<vmem>>, %arg4: memref<128x128xbf16, #tpu.memory_space<vmem>>, %arg5: memref<1x128xf32, #tpu.memory_space<vmem>>, %arg6: memref<128x128xbf16, #tpu.memory_space<vmem>>, %arg7: memref<1x128xf32, #tpu.memory_space<vmem>>, %arg8: memref<16x128xf32, #tpu.memory_space<vmem>>) attributes {dimension_semantics = [#tpu.dimension_semantics<parallel>], iteration_bounds = array<i64: 1>, scalar_prefetch = 0 : i64, scratch_operands = 0 : i64, tpu.core_type = #tpu.core_type<tc>, window_params = [{transform_indices = @transform_0, window_bounds = array<i64: 16, 16>}, {pipeline_mode = #tpu.pipeline_mode<synchronous>, transform_indices = @transform_1, window_bounds = array<i64: 16, 128>}, {pipeline_mode = #tpu.pipeline_mode<synchronous>, transform_indices = @transform_2, window_bounds = array<i64: 1, 128>}, {pipeline_mode = #tpu.pipeline_mode<synchronous>, transform_indices = @transform_3, window_bounds = array<i64: 128, 128>}, {pipeline_mode = #tpu.pipeline_mode<synchronous>, transform_indices = @transform_4, window_bounds = array<i64: 1, 128>}, {pipeline_mode = #tpu.pipeline_mode<synchronous>, transform_indices = @transform_5, window_bounds = array<i64: 128, 128>}, {pipeline_mode = #tpu.pipeline_mode<synchronous>, transform_indices = @transform_6, window_bounds = array<i64: 1, 128>}, {transform_indices = @transform_7, window_bounds = array<i64: 16, 128>}]} {
    %c0 = arith.constant 0 : index
    %c0_0 = arith.constant 0 : index
    %0 = vector.load %arg1[%c0, %c0_0] : memref<16x16xf32, #tpu.memory_space<vmem>>, vector<16x16xf32>
    %1 = arith.truncf %0 : vector<16x16xf32> to vector<16x16xbf16>
    %c0_1 = arith.constant 0 : index
    %c0_2 = arith.constant 0 : index
    %2 = vector.load %arg2[%c0_1, %c0_2] : memref<16x128xbf16, #tpu.memory_space<vmem>>, vector<16x128xbf16>
    %cst = arith.constant dense<0.000000e+00> : vector<16x128xf32>
    %3 = tpu.matmul %1, %2, %cst {dimension_numbers = #tpu.dot_dimension_numbers<[1], [0], [0], [1], [0, 0, 1, 1], [], []>} : vector<16x16xbf16>, vector<16x128xbf16>, vector<16x128xf32> -> vector<16x128xf32>
    %c0_3 = arith.constant 0 : index
    %c0_4 = arith.constant 0 : index
    %4 = vector.load %arg3[%c0_3, %c0_4] : memref<1x128xf32, #tpu.memory_space<vmem>>, vector<1x128xf32>
    %5 = vector.broadcast %4 : vector<1x128xf32> to vector<16x128xf32>
    %6 = arith.addf %3, %5 : vector<16x128xf32>
    %cst_5 = arith.constant 0.000000e+00 : f32
    %7 = vector.broadcast %cst_5 : f32 to vector<16x128xf32>
    %8 = arith.maximumf %6, %7 : vector<16x128xf32>
    %9 = arith.truncf %8 : vector<16x128xf32> to vector<16x128xbf16>
    %c0_6 = arith.constant 0 : index
    %c0_7 = arith.constant 0 : index
    %10 = vector.load %arg4[%c0_6, %c0_7] : memref<128x128xbf16, #tpu.memory_space<vmem>>, vector<128x128xbf16>
    %cst_8 = arith.constant dense<0.000000e+00> : vector<16x128xf32>
    %11 = tpu.matmul %9, %10, %cst_8 {dimension_numbers = #tpu.dot_dimension_numbers<[1], [0], [0], [1], [0, 0, 1, 1], [], []>} : vector<16x128xbf16>, vector<128x128xbf16>, vector<16x128xf32> -> vector<16x128xf32>
    %c0_9 = arith.constant 0 : index
    %c0_10 = arith.constant 0 : index
    %12 = vector.load %arg5[%c0_9, %c0_10] : memref<1x128xf32, #tpu.memory_space<vmem>>, vector<1x128xf32>
    %13 = vector.broadcast %12 : vector<1x128xf32> to vector<16x128xf32>
    %14 = arith.addf %11, %13 : vector<16x128xf32>
    %cst_11 = arith.constant 0.000000e+00 : f32
    %15 = vector.broadcast %cst_11 : f32 to vector<16x128xf32>
    %16 = arith.maximumf %14, %15 : vector<16x128xf32>
    %17 = arith.truncf %16 : vector<16x128xf32> to vector<16x128xbf16>
    %c0_12 = arith.constant 0 : index
    %c0_13 = arith.constant 0 : index
    %18 = vector.load %arg6[%c0_12, %c0_13] : memref<128x128xbf16, #tpu.memory_space<vmem>>, vector<128x128xbf16>
    %cst_14 = arith.constant dense<0.000000e+00> : vector<16x128xf32>
    %19 = tpu.matmul %17, %18, %cst_14 {dimension_numbers = #tpu.dot_dimension_numbers<[1], [0], [0], [1], [0, 0, 1, 1], [], []>} : vector<16x128xbf16>, vector<128x128xbf16>, vector<16x128xf32> -> vector<16x128xf32>
    %c0_15 = arith.constant 0 : index
    %c0_16 = arith.constant 0 : index
    %20 = vector.load %arg7[%c0_15, %c0_16] : memref<1x128xf32, #tpu.memory_space<vmem>>, vector<1x128xf32>
    %21 = vector.broadcast %20 : vector<1x128xf32> to vector<16x128xf32>
    %22 = arith.addf %19, %21 : vector<16x128xf32>
    %c0_17 = arith.constant 0 : index
    %c0_18 = arith.constant 0 : index
    %23 = vector.load %arg8[%c0_17, %c0_18] : memref<16x128xf32, #tpu.memory_space<vmem>>, vector<16x128xf32>
    tpu.vector_store %arg8[%c0_17, %c0_18], %22 {strides = array<i32>} : memref<16x128xf32, #tpu.memory_space<vmem>>, vector<16x128xf32>,
    return
  }
  func.func @transform_0(%arg0: i32) -> (i32, i32) {
    %c0_i32 = arith.constant 0 : i32
    %c0_i32_0 = arith.constant 0 : i32
    return %arg0, %c0_i32 : i32, i32
  }
  func.func @transform_1(%arg0: i32) -> (i32, i32) {
    %c0_i32 = arith.constant 0 : i32
    %c0_i32_0 = arith.constant 0 : i32
    %c0_i32_1 = arith.constant 0 : i32
    return %c0_i32, %c0_i32_0 : i32, i32
  }
  func.func @transform_2(%arg0: i32) -> (i32, i32) {
    %c0_i32 = arith.constant 0 : i32
    %c0_i32_0 = arith.constant 0 : i32
    %c0_i32_1 = arith.constant 0 : i32
    return %c0_i32, %c0_i32_0 : i32, i32
  }
  func.func @transform_3(%arg0: i32) -> (i32, i32) {
    %c0_i32 = arith.constant 0 : i32
    %c0_i32_0 = arith.constant 0 : i32
    %c0_i32_1 = arith.constant 0 : i32
    return %c0_i32, %c0_i32_0 : i32, i32
  }
  func.func @transform_4(%arg0: i32) -> (i32, i32) {
    %c0_i32 = arith.constant 0 : i32
    %c0_i32_0 = arith.constant 0 : i32
    %c0_i32_1 = arith.constant 0 : i32
    return %c0_i32, %c0_i32_0 : i32, i32
  }
  func.func @transform_5(%arg0: i32) -> (i32, i32) {
    %c0_i32 = arith.constant 0 : i32
    %c0_i32_0 = arith.constant 0 : i32
    %c0_i32_1 = arith.constant 0 : i32
    return %c0_i32, %c0_i32_0 : i32, i32
  }
  func.func @transform_6(%arg0: i32) -> (i32, i32) {
    %c0_i32 = arith.constant 0 : i32
    %c0_i32_0 = arith.constant 0 : i32
    %c0_i32_1 = arith.constant 0 : i32
    return %c0_i32, %c0_i32_0 : i32, i32
  }
  func.func @transform_7(%arg0: i32) -> (i32, i32) {
    %c0_i32 = arith.constant 0 : i32
    %c0_i32_0 = arith.constant 0 : i32
    return %arg0, %c0_i32 : i32, i32
  }
}

</mosaic_0001>

<bundles_post_ra>
// kernel: tpu_custom_call.1
= control target key start
LH: loop header
LB: loop body
LE: loop exit
PB: predicated region body
PF: predicated region fallthrough
CT: control target
= control target key end

     0   :  { %6 = vsyncpa [#allocation3], 0  ;;  %s114_s0 = inlined_call_operand.hbm [shape: f32[8,128], index: 0, kind: input, shape index: {}]   ;;  %s115_s1 = inlined_call_operand.hbm [shape: f32[8,128], index: 1, kind: output, shape index: {}]  }
   0x1   :  { %7 = vsyncpa [#allocation4], 0  ;;  %s13_s8 = sshll.u32 %s114_s0, 4  ;;  %s96_s9 = smov [#allocation2]   ;;  %s14_s8 = int_to_ptr.hbm [resolvable:$true] %s13_s8 }
   0x2   :  { %s15_s10 = sshll.u32 %s96_s9, 4  ;;  %s16_s10 = int_to_ptr.vmem [resolvable:$true] %s15_s10 }
   0x3   :  { %18 = dma.hbm_to_vmem [thread:$0]  %s14_s8, 128, %s16_s10, [#allocation3]  }
   0x4   :  { %92 = dma.done.wait [#allocation3], 128  }
   0x5   :  { %93 = vsyncadd [#allocation3], 4294967168  ;;  %s97_s11 = smov [#allocation5]   ;;  %s32_s15 = sshll.u32 %s115_s1, 4  ;;  %v23_v0 = vld [vmem:[#allocation2] sm:$0xff]  ;;  %s33_s15 = int_to_ptr.hbm [resolvable:$true] %s32_s15 }
   0x6   :  { %s30_s12 = sshll.u32 %s97_s11, 4  ;;  %24 = vst [vmem:[#allocation5] sm:$0xff] %v23_v0  ;;  %s31_s12 = int_to_ptr.vmem [resolvable:$true] %s30_s12 }
   0x7   :  { %35 = dma.vmem_to_hbm [thread:$0]  %s31_s12, 128, %s33_s15, [#allocation4]  }
   0x8   :  { %94 = dma.done.wait [#allocation4], 128  }
   0x9   :  { %95 = vsyncadd [#allocation4], 4294967168 }
   0xa   :  { %40 = vsyncpa [#allocation3], 1 }
   0xb   :  { %41 = vsyncpa [#allocation4], 1 }

// kernel: tpu_custom_call.1
= control target key start
LH: loop header
LB: loop body
LE: loop exit
PB: predicated region body
PF: predicated region fallthrough
CT: control target
= control target key end

     0   :  { %12 = vsyncpa [#allocation3], 0  ;;  %s622_s0 = inlined_call_operand.hbm [shape: f32[16,16], index: 0, kind: input, shape index: {}]   ;;  %s623_s1 = inlined_call_operand.hbm [shape: bf16[16,128], index: 1, kind: input, shape index: {}]   ;;  %s624_s2 = inlined_call_operand.vmem [shape: f32[1,128], index: 2, kind: input, shape index: {}]   ;;  %s625_s3 = inlined_call_operand.hbm [shape: bf16[128,128], index: 3, kind: input, shape index: {}]   ;;  %s626_s4 = inlined_call_operand.vmem [shape: f32[1,128], index: 4, kind: input, shape index: {}]   ;;  %s627_s5 = inlined_call_operand.hbm [shape: bf16[128,128], index: 5, kind: input, shape index: {}]   ;;  %s628_s6 = inlined_call_operand.vmem [shape: f32[1,128], index: 6, kind: input, shape index: {}]   ;;  %s629_s7 = inlined_call_operand.hbm [shape: f32[16,128], index: 7, kind: output, shape index: {}]  }
   0x1   :  { %13 = vsyncpa [#allocation6], 0 }
   0x2   :  { %14 = vsyncpa [#allocation9], 0  ;;  %s33_s26 = sshll.u32 %s623_s1, 4  ;;  %s34_s26 = int_to_ptr.hbm [resolvable:$true] %s33_s26 }
   0x3   :  { %15 = vsyncpa [#allocation4], 0  ;;  %s543_s27 = smov [#allocation5]   ;;  %s20_s8 = sshll.u32 %s622_s0, 4  ;;  %s21_s8 = int_to_ptr.hbm [resolvable:$true] %s20_s8 }
   0x4   :  { %s35_s28 = sshll.u32 %s543_s27, 4  ;;  %s544_s9 = smov 64   ;;  %s36_s28 = int_to_ptr.vmem [resolvable:$true] %s35_s28 }
   0x5   :  { %s545_s10 = smov 4   ;;  %s546_s11 = smov [#allocation2]  }
   0x6   :  { %41 = dma.hbm_to_vmem [thread:$0]  %s34_s26, 128, %s36_s28, [#allocation6], %s544_s9, %s544_s9, %s545_s10  }
   0x7   :  { %s22_s12 = sshll.u32 %s546_s11, 4  ;;  %s547_s13 = smov 128   ;;  %s23_s12 = int_to_ptr.vmem [resolvable:$true] %s22_s12 }
   0x8   :  { %s548_s14 = smov 8   ;;  %s48_s16 = sshll.u32 %s625_s3, 4  ;;  %s49_s16 = int_to_ptr.hbm [resolvable:$true] %s48_s16 }
   0x9   :  { %28 = dma.hbm_to_vmem [thread:$0]  %s21_s8, 256, %s23_s12, [#allocation3], %s547_s13, %s547_s13, %s548_s14  }
   0xa   :  { %s549_s17 = smov [#allocation7]   ;;  %s63_s20 = sshll.u32 %s627_s5, 4  ;;  %s64_s20 = int_to_ptr.hbm [resolvable:$true] %s63_s20 }
   0xb   :  { %s50_s0 = sshll.u32 %s549_s17, 4  ;;  %s550_s21 = smov [#allocation8]   ;;  %s51_s0 = int_to_ptr.vmem [resolvable:$true] %s50_s0 }
   0xc   :  { %56 = dma.hbm_to_vmem [thread:$0]  %s49_s16, 1024, %s51_s0, [#allocation6], %s544_s9, %s544_s9, %s545_s10  }
   0xd   :  { %s65_s22 = sshll.u32 %s550_s21, 4  ;;  %s66_s22 = int_to_ptr.vmem [resolvable:$true] %s65_s22 }
   0xe   :  { %71 = dma.hbm_to_vmem [thread:$0]  %s64_s20, 1024, %s66_s22, [#allocation9], %s544_s9, %s544_s9, %s545_s10  }
   0xf   :  { %535 = dma.done.wait [#allocation3], 256  }
  0x10   :  { %536 = vsyncadd [#allocation3], 4294967040 }
  0x11   :  { %537 = dma.done.wait [#allocation6], 1152  }
  0x12   :  { %538 = vsyncadd [#allocation6], 4294966144 }
  0x13   :  { %539 = dma.done.wait [#allocation9], 1024  }
  0x14   :  { %540 = vsyncadd [#allocation9], 4294966272  ;;  %v386_v0 = vld [vmem:[#allocation5] sm:$0xff]  ;;  %v91_v1 = vld [vmem:[#allocation2] sm:$0xff]  ;;  %vm106_vm0 = vcmask 130048   ;;  %s551_s26 = smov [#allocation10]  }
  0x15   :  { %v92_v2 = vld [vmem:[#allocation2 + $0x8] sm:$0xff]  ;;  %v394_v4 = vld [vmem:[#allocation7 + $0x38] sm:$0xff]  ;;  %117 = vmatpush.bf16.msra.mxu0 %v386_v0  ;;  %v392_v6 = vld [vmem:[#allocation7 + $0x28] sm:$0xff]  ;;  %s300_s27 = sshll.u32 %s551_s26, 4  ;;  %s301_s27 = int_to_ptr.vmem [resolvable:$true] %s300_s27 }
  0x16   :  { %v93_v3 = vpack.c.bf16 %v92_v2, %v91_v1  ;;  %195 = vmatpush.bf16.msra.mxu1 %v394_v4  ;;  %v393_v5 = vld [vmem:[#allocation7 + $0x30] sm:$0xff]  ;;  %v391_v7 = vld [vmem:[#allocation7 + $0x20] sm:$0xff]  ;;  %v390_v8 = vld [vmem:[#allocation7 + $0x18] sm:$0xff] }
  0x17   :  { %v389_v9 = vld [vmem:[#allocation7 + $0x10] sm:$0xff]  ;;  %v388_v10 = vld [vmem:[#allocation7 + $0x8] sm:$0xff]  ;;  %v387_v11 = vld [vmem:[#allocation7] sm:$0xff] }
  0x18   :  { %321 = vmatmul.msk.bf16.vlgmr.msra.gmra.mxu0 %vm106_vm0, %v93_v3  ;;  %v402_v12 = vld [vmem:[#allocation8 + $0x38] sm:$0xff]  ;;  %v401_v13 = vld [vmem:[#allocation8 + $0x30] sm:$0xff]  ;;  %v400_v14 = vld [vmem:[#allocation8 + $0x28] sm:$0xff] }
  0x19   :  { %280 = vmatpush.bf16.msra.mxu2 %v402_v12  ;;  %v399_v15 = vld [vmem:[#allocation8 + $0x20] sm:$0xff]  ;;  %v412_v17 = vld [vmem:[%s624_s2] ss:$0 sm:$0xff]  ;;  %v398_v24 = vld [vmem:[#allocation8 + $0x18] sm:$0xff] }
  0x1a   :  { %196 = vmatpush.bf16.msra.mxu1 %v393_v5  ;;  %v397_v25 = vld [vmem:[#allocation8 + $0x10] sm:$0xff]  ;;  %v396_v26 = vld [vmem:[#allocation8 + $0x8] sm:$0xff]  ;;  %v395_v27 = vld [vmem:[#allocation8] sm:$0xff] }
  0x1b   :  { %v413_v29 = vld [vmem:[%s626_s4] ss:$0 sm:$0xff]  ;;  %s302_s4 = sshll.u32 %s629_s7, 4  ;;  %s303_s4 = int_to_ptr.hbm [resolvable:$true] %s302_s4 }
  0x1c   :  { %v414_v36 = vld [vmem:[%s628_s6] ss:$0 sm:$0xff] }
  0x1d   :  { %281 = vmatpush.bf16.msra.mxu2 %v401_v13 }
  0x1e   :  { %197 = vmatpush.bf16.msra.mxu1 %v392_v6 }
  0x21   :  { %282 = vmatpush.bf16.msra.mxu2 %v400_v14 }
  0x22   :  { %198 = vmatpush.bf16.msra.mxu1 %v391_v7 }
  0x25   :  { %283 = vmatpush.bf16.msra.mxu2 %v399_v15 }
  0x26   :  { %199 = vmatpush.bf16.msra.mxu1 %v390_v8 }
  0x29   :  { %284 = vmatpush.bf16.msra.mxu2 %v398_v24 }
  0x2a   :  { %200 = vmatpush.bf16.msra.mxu1 %v389_v9 }
  0x2d   :  { %285 = vmatpush.bf16.msra.mxu2 %v397_v25 }
  0x2e   :  { %201 = vmatpush.bf16.msra.mxu1 %v388_v10 }
  0x31   :  { %286 = vmatpush.bf16.msra.mxu2 %v396_v26 }
  0x32   :  { %202 = vmatpush.bf16.msra.mxu1 %v387_v11 }
  0x35   :  { %287 = vmatpush.bf16.msra.mxu2 %v395_v27 }
  0x95   :  { %v119_v16 = vpop.f32.mrf.mxu0 }
  0x96   :  { %v120_v18 = vadd.f32 %v412_v17, %v119_v16 }
  0x98   :  { %v124_v21 = vmax.f32 %v120_v18, 0.0 }
  0x9d   :  { %v121_v19 = vpop.f32.mrf.mxu0 }
  0x9e   :  { %v122_v20 = vadd.f32 %v412_v17, %v121_v19 }
  0xa0   :  { %v125_v22 = vmax.f32 %v122_v20, 0.0 }
  0xa2   :  { %v126_v23 = vpack.c.bf16 %v125_v22, %v124_v21 }
  0xa4   :  { %203 = vmatmul.bf16.vlgmr.msra.gmra.mxu1 %v126_v23 }
 0x121   :  { %v204_v28 = vpop.f32.mrf.mxu1 }
 0x122   :  { %v205_v30 = vadd.f32 %v413_v29, %v204_v28 }
 0x124   :  { %v209_v33 = vmax.f32 %v205_v30, 0.0 }
 0x129   :  { %v206_v31 = vpop.f32.mrf.mxu1 }
 0x12a   :  { %v207_v32 = vadd.f32 %v413_v29, %v206_v31 }
 0x12c   :  { %v210_v34 = vmax.f32 %v207_v32, 0.0 }
 0x12e   :  { %v211_v35 = vpack.c.bf16 %v210_v34, %v209_v33 }
 0x130   :  { %288 = vmatmul.bf16.vlgmr.msra.gmra.mxu2 %v211_v35 }
 0x1b3   :  { %v289_v37 = vpop.f32.mrf.mxu2 }
 0x1b4   :  { %v290_v38 = vadd.f32 %v414_v36, %v289_v37 }
 0x1b6   :  { %294 = vst [vmem:[#allocation10] sm:$0xff] %v290_v38 }
 0x1bb   :  { %v291_v39 = vpop.f32.mrf.mxu2 }
 0x1bc   :  { %v292_v40 = vadd.f32 %v414_v36, %v291_v39 }
 0x1be   :  { %295 = vst [vmem:[#allocation10 + $0x8] sm:$0xff] %v292_v40 }
 0x1bf   :  { %308 = dma.vmem_to_hbm [thread:$0]  %s301_s27, 256, %s303_s4, [#allocation4], %s547_s13, %s547_s13, %s548_s14  }
 0x1c0   :  { %541 = dma.done.wait [#allocation4], 256  }
 0x1c1   :  { %542 = vsyncadd [#allocation4], 4294967040 }
 0x1c2   :  { %313 = vsyncpa [#allocation3], 1 }
 0x1c3   :  { %314 = vsyncpa [#allocation6], 1 }
 0x1c4   :  { %315 = vsyncpa [#allocation9], 1 }
 0x1c5   :  { %316 = vsyncpa [#allocation4], 1 }

</bundles_post_ra>
